<compile_context>
chip_gen: v7x
topology: tpu7x:2x2x1
jax: 0.10.0
libtpu: 0.0.40
codegen_flags: <defaults>
</compile_context>

<pallas_src>
import jax
import jax.numpy as jnp
from jax.experimental import pallas as pl
from jax.experimental.pallas import tpu as pltpu


def _round_up(n: int, k: int) -> int:
    return ((n + k - 1) // k) * k


def _choose_batch_tile(m: int, c: int, bytes_per_elem: int = 4,
                       budget_bytes: int = 16 * 1024 * 1024) -> int:
    """Pick a batch tile so the double-buffered working set fits the budget.

    Per grid step (double-buffered): 2 * (m [x] + 1 [u] + 1 [out]) * TB * c * 4B.
    """
    per_row = 2 * (m + 2) * c * bytes_per_elem
    tb = budget_bytes // per_row
    tb = max(8, (tb // 8) * 8)   # sublane multiple
    return min(tb, 1024)


def embracenet_kernel(x_ref, u_ref, o_ref):
    """x_ref: (m, TB, C) f32; u_ref: (TB, C) f32 uniforms in [0,1); o_ref: (TB, C)."""
    mdim = x_ref.shape[0]

    # ---- presence flags & per-row count of available modalities -------------
    # any(x != 0) over the feature axis (matches torch.nonzero semantics,
    # including rows containing NaN).
    presents = []
    total = None
    for i in range(mdim):  # m is a small static python int -> fully unrolled
        xi = x_ref[i]                                               # (TB, C)
        pi = jnp.max((xi != 0.0).astype(jnp.float32), axis=-1, keepdims=True)  # (TB, 1)
        presents.append(pi)
        total = pi if total is None else total + pi

    # ---- inverse-CDF categorical sampling over modalities -------------------
    # u_scaled is uniform on [0, total); modality i owns the half-open interval
    # [cum_{i-1}, cum_i) whose width is its presence flag -> exactly multinomial
    # on presence/total. Missing modalities own zero-width intervals and are
    # never selected.
    u_scaled = u_ref[...] * total                                   # (TB, C)

    # Initialize with modality 0 (its interval is [0, p0)); later modalities
    # select into `out` on their own disjoint intervals. If ALL modalities are
    # missing for a row, x[0] for that row is all zeros, so the output is 0.
    # TODO(synk): PyTorch's multinomial would error/NaN on an all-missing row;
    # here it silently yields zeros.
    out = x_ref[0]
    low = presents[0]
    for i in range(1, mdim):
        high = low + presents[i]
        sel = jnp.logical_and(u_scaled >= low, u_scaled < high)     # (TB, C)
        out = jnp.where(sel, x_ref[i], out)
        low = high

    o_ref[...] = out.astype(o_ref.dtype)


def embracenet(x, key):
    """EmbraceNet forward. x: (m, b, c) float32, key: jax PRNG key -> (b, c) f32."""
    x = jnp.asarray(x, jnp.float32)
    m, b, c = x.shape

    # Lane-dense feature dim, sublane/tile-aligned batch dim (layout plumbing).
    c_pad = _round_up(c, 128)
    tb = _choose_batch_tile(m, c_pad)
    tb = min(tb, _round_up(b, 8))
    b_pad = _round_up(b, tb)
    n_tiles = b_pad // tb

    x_p = jnp.pad(x, ((0, 0), (0, b_pad - b), (0, c_pad - c)))
    # One uniform per (batch, feature) column == one multinomial draw per column.
    u = jax.random.uniform(key, (b_pad, c_pad), dtype=jnp.float32)

    out = pl.pallas_call(
        embracenet_kernel,
        out_shape=jax.ShapeDtypeStruct((b_pad, c_pad), jnp.float32),
        grid_spec=pltpu.PrefetchScalarGridSpec(
            num_scalar_prefetch=0,
            grid=(n_tiles,),
            in_specs=[
                pl.BlockSpec((m, tb, c_pad), lambda i: (0, i, 0)),
                pl.BlockSpec((tb, c_pad), lambda i: (i, 0)),
            ],
            out_specs=pl.BlockSpec((tb, c_pad), lambda i: (i, 0)),
        ),
        compiler_params=pltpu.CompilerParams(
            dimension_semantics=("parallel",),     # batch tiles are independent
            vmem_limit_bytes=32 * 1024 * 1024,     # safe on v5e/v6e/v7x
        ),
    )(x_p, u)

    return out[:b, :c]


if __name__ == "__main__":
    # Small shapes consistent with the module: m modalities, batch b, c features.
    # Deliberately non-aligned (b=10, c=96) to exercise the padding path.
    m, b, c = 3, 10, 96
    root = jax.random.PRNGKey(0)
    k_data, k_sample = jax.random.split(root)

    x = jax.random.normal(k_data, (m, b, c), dtype=jnp.float32)
    # Simulate missing modalities (all-zero feature vectors for some samples):
    x = x.at[1, 0:2, :].set(0.0)   # modality 1 missing for batch elements 0, 1
    x = x.at[2, 3, :].set(0.0)     # modality 2 missing for batch element 3

    e = embracenet(x, k_sample)
    e = jax.block_until_ready(e)

    assert e.shape == (b, c) and e.dtype == jnp.float32

    # Every output element must exactly equal the corresponding feature of one
    # of the *present* modalities for that batch element.
    present = (jnp.max((x != 0.0).astype(jnp.float32), axis=-1, keepdims=True) > 0.0)  # (m, b, 1)
    diffs = jnp.abs(e[None, :, :] - x)                                                  # (m, b, c)
    diffs = jnp.where(present, diffs, jnp.inf)
    assert bool(jnp.all(jnp.min(diffs, axis=0) == 0.0))
    assert bool(jnp.all(jnp.isfinite(e)))
    # Missing modalities must never be selected where another modality exists:
    # for batch element 3 (modality 2 missing) output must match modality 0 or 1.
    d3 = jnp.minimum(jnp.abs(e[3] - x[0, 3]), jnp.abs(e[3] - x[1, 3]))
    assert bool(jnp.all(d3 == 0.0))

    print("KERNEL_OK")
</pallas_src>

<mosaic_0001>
module attributes {stable_mosaic.version = 11 : i64} {
  func.func @embracenet_kernel(%arg0: i32, %arg1: memref<3x16x128xf32, #tpu.memory_space<vmem>>, %arg2: memref<16x128xf32, #tpu.memory_space<vmem>>, %arg3: memref<16x128xf32, #tpu.memory_space<vmem>>) attributes {dimension_semantics = [#tpu.dimension_semantics<parallel>], iteration_bounds = array<i64: 1>, scalar_prefetch = 0 : i64, scratch_operands = 0 : i64, tpu.core_type = #tpu.core_type<tc>, window_params = [{transform_indices = @transform_0, window_bounds = array<i64: 3, 16, 128>}, {transform_indices = @transform_1, window_bounds = array<i64: 16, 128>}, {transform_indices = @transform_2, window_bounds = array<i64: 16, 128>}]} {
    %c0 = arith.constant 0 : index
    %c0_0 = arith.constant 0 : index
    %c0_1 = arith.constant 0 : index
    %0 = vector.load %arg1[%c0, %c0_0, %c0_1] : memref<3x16x128xf32, #tpu.memory_space<vmem>>, vector<1x16x128xf32>
    %1 = vector.shape_cast %0 : vector<1x16x128xf32> to vector<16x128xf32>
    %cst = arith.constant 0.000000e+00 : f32
    %2 = vector.broadcast %cst : f32 to vector<16x128xf32>
    %3 = arith.cmpf one, %1, %2 : vector<16x128xf32>
    %4 = arith.extui %3 : vector<16x128xi1> to vector<16x128xi32>
    %5 = arith.sitofp %4 : vector<16x128xi32> to vector<16x128xf32>
    %cst_2 = arith.constant dense<0xFF800000> : vector<16xf32>
    %6 = vector.multi_reduction <maximumf>, %5, %cst_2 [1] : vector<16x128xf32> to vector<16xf32>
    %7 = vector.shape_cast %6 : vector<16xf32> to vector<16x1xf32>
    %c1 = arith.constant 1 : index
    %c0_3 = arith.constant 0 : index
    %c0_4 = arith.constant 0 : index
    %8 = vector.load %arg1[%c1, %c0_3, %c0_4] : memref<3x16x128xf32, #tpu.memory_space<vmem>>, vector<1x16x128xf32>
    %9 = vector.shape_cast %8 : vector<1x16x128xf32> to vector<16x128xf32>
    %cst_5 = arith.constant 0.000000e+00 : f32
    %10 = vector.broadcast %cst_5 : f32 to vector<16x128xf32>
    %11 = arith.cmpf one, %9, %10 : vector<16x128xf32>
    %12 = arith.extui %11 : vector<16x128xi1> to vector<16x128xi32>
    %13 = arith.sitofp %12 : vector<16x128xi32> to vector<16x128xf32>
    %cst_6 = arith.constant dense<0xFF800000> : vector<16xf32>
    %14 = vector.multi_reduction <maximumf>, %13, %cst_6 [1] : vector<16x128xf32> to vector<16xf32>
    %15 = vector.shape_cast %14 : vector<16xf32> to vector<16x1xf32>
    %16 = arith.addf %7, %15 : vector<16x1xf32>
    %c2 = arith.constant 2 : index
    %c0_7 = arith.constant 0 : index
    %c0_8 = arith.constant 0 : index
    %17 = vector.load %arg1[%c2, %c0_7, %c0_8] : memref<3x16x128xf32, #tpu.memory_space<vmem>>, vector<1x16x128xf32>
    %18 = vector.shape_cast %17 : vector<1x16x128xf32> to vector<16x128xf32>
    %cst_9 = arith.constant 0.000000e+00 : f32
    %19 = vector.broadcast %cst_9 : f32 to vector<16x128xf32>
    %20 = arith.cmpf one, %18, %19 : vector<16x128xf32>
    %21 = arith.extui %20 : vector<16x128xi1> to vector<16x128xi32>
    %22 = arith.sitofp %21 : vector<16x128xi32> to vector<16x128xf32>
    %cst_10 = arith.constant dense<0xFF800000> : vector<16xf32>
    %23 = vector.multi_reduction <maximumf>, %22, %cst_10 [1] : vector<16x128xf32> to vector<16xf32>
    %24 = vector.shape_cast %23 : vector<16xf32> to vector<16x1xf32>
    %25 = arith.addf %16, %24 : vector<16x1xf32>
    %c0_11 = arith.constant 0 : index
    %c0_12 = arith.constant 0 : index
    %26 = vector.load %arg2[%c0_11, %c0_12] : memref<16x128xf32, #tpu.memory_space<vmem>>, vector<16x128xf32>
    %27 = vector.broadcast %25 : vector<16x1xf32> to vector<16x128xf32>
    %28 = arith.mulf %26, %27 : vector<16x128xf32>
    %c0_13 = arith.constant 0 : index
    %c0_14 = arith.constant 0 : index
    %c0_15 = arith.constant 0 : index
    %29 = vector.load %arg1[%c0_13, %c0_14, %c0_15] : memref<3x16x128xf32, #tpu.memory_space<vmem>>, vector<1x16x128xf32>
    %30 = vector.shape_cast %29 : vector<1x16x128xf32> to vector<16x128xf32>
    %31 = arith.addf %7, %15 : vector<16x1xf32>
    %32 = vector.broadcast %7 : vector<16x1xf32> to vector<16x128xf32>
    %33 = arith.cmpf oge, %28, %32 : vector<16x128xf32>
    %34 = vector.broadcast %31 : vector<16x1xf32> to vector<16x128xf32>
    %35 = arith.cmpf olt, %28, %34 : vector<16x128xf32>
    %36 = arith.andi %33, %35 : vector<16x128xi1>
    %c1_16 = arith.constant 1 : index
    %c0_17 = arith.constant 0 : index
    %c0_18 = arith.constant 0 : index
    %37 = vector.load %arg1[%c1_16, %c0_17, %c0_18] : memref<3x16x128xf32, #tpu.memory_space<vmem>>, vector<1x16x128xf32>
    %38 = vector.shape_cast %37 : vector<1x16x128xf32> to vector<16x128xf32>
    %39 = arith.select %36, %38, %30 : vector<16x128xi1>, vector<16x128xf32>
    %40 = arith.addf %31, %24 : vector<16x1xf32>
    %41 = vector.broadcast %31 : vector<16x1xf32> to vector<16x128xf32>
    %42 = arith.cmpf oge, %28, %41 : vector<16x128xf32>
    %43 = vector.broadcast %40 : vector<16x1xf32> to vector<16x128xf32>
    %44 = arith.cmpf olt, %28, %43 : vector<16x128xf32>
    %45 = arith.andi %42, %44 : vector<16x128xi1>
    %c2_19 = arith.constant 2 : index
    %c0_20 = arith.constant 0 : index
    %c0_21 = arith.constant 0 : index
    %46 = vector.load %arg1[%c2_19, %c0_20, %c0_21] : memref<3x16x128xf32, #tpu.memory_space<vmem>>, vector<1x16x128xf32>
    %47 = vector.shape_cast %46 : vector<1x16x128xf32> to vector<16x128xf32>
    %48 = arith.select %45, %47, %39 : vector<16x128xi1>, vector<16x128xf32>
    %c0_22 = arith.constant 0 : index
    %c0_23 = arith.constant 0 : index
    %49 = vector.load %arg3[%c0_22, %c0_23] : memref<16x128xf32, #tpu.memory_space<vmem>>, vector<16x128xf32>
    tpu.vector_store %arg3[%c0_22, %c0_23], %48 {strides = array<i32>} : memref<16x128xf32, #tpu.memory_space<vmem>>, vector<16x128xf32>,
    return
  }
  func.func @transform_0(%arg0: i32) -> (i32, i32, i32) {
    %c0_i32 = arith.constant 0 : i32
    %c0_i32_0 = arith.constant 0 : i32
    %c0_i32_1 = arith.constant 0 : i32
    return %c0_i32, %arg0, %c0_i32_0 : i32, i32, i32
  }
  func.func @transform_1(%arg0: i32) -> (i32, i32) {
    %c0_i32 = arith.constant 0 : i32
    %c0_i32_0 = arith.constant 0 : i32
    return %arg0, %c0_i32 : i32, i32
  }
  func.func @transform_2(%arg0: i32) -> (i32, i32) {
    %c0_i32 = arith.constant 0 : i32
    %c0_i32_0 = arith.constant 0 : i32
    return %arg0, %c0_i32 : i32, i32
  }
}

</mosaic_0001>

<bundles_post_ra>
// kernel: tpu_custom_call.1
= control target key start
LH: loop header
LB: loop body
LE: loop exit
PB: predicated region body
PF: predicated region fallthrough
CT: control target
= control target key end

     0   :  { %7 = vsyncpa [#allocation3], 0  ;;  %s272_s0 = inlined_call_operand.hbm [shape: f32[3,16,128], index: 0, kind: input, shape index: {}]   ;;  %s273_s1 = inlined_call_operand.hbm [shape: f32[16,128], index: 1, kind: input, shape index: {}]   ;;  %s274_s2 = inlined_call_operand.hbm [shape: f32[16,128], index: 2, kind: output, shape index: {}]  }
   0x1   :  { %8 = vsyncpa [#allocation6], 0 }
   0x2   :  { %9 = vsyncpa [#allocation4], 0  ;;  %s206_s9 = smov [#allocation2]   ;;  %s134_s13 = scalar_lea.hbm %s272_s0, 768 }
   0x3   :  { %s15_s10 = sshll.u32 %s206_s9, 4  ;;  %p135_p0 = scmp.ne.s32.totalorder %s272_s0, %s134_s13  ;;  %s16_s10 = int_to_ptr.vmem [resolvable:$true] %s15_s10 }
   0x4   :  { %p138_p1 = scmp.lt.u32.totalorder %s134_s13, %s272_s0 }
   0x6   :  { %p140_p2 = pnand %p138_p1, %p135_p0 }
   0x8   :  { %143 = shalt.err (!%p140_p2)
}
   0x9   :  { %s144_s18 = scalar_lea.vmem %s16_s10, 768  ;;  %p149_p4 = scmp.lt.s32.totalorder %s16_s10, %s16_s10 }
   0xa   :  { %p145_p3 = scmp.ne.s32.totalorder %s16_s10, %s144_s18  ;;  %p150_p5 = scmp.lt.s32.totalorder %s144_s18, %s144_s18 }
   0xc   :  { %p151_p6 = por %p150_p5, %p149_p4 }
   0xe   :  { %p152_p7 = pnand %p151_p6, %p145_p3 }
  0x10   :  { %155 = shalt.err (!%p152_p7)
}
  0x11   :  { %s207_s19 = smov 128   ;;  %s208_s20 = smov 8  }
  0x12   :  { %21 = dma.hbm_to_vmem [thread:$0]  %s272_s0, 768, %s16_s10, [#allocation3], %s207_s19, %s207_s19, %s208_s20  }
  0x13   :  { %s209_s23 = smov [#allocation5]   ;;  %s156_s27 = scalar_lea.hbm %s273_s1, 256 }
  0x14   :  { %s27_s24 = sshll.u32 %s209_s23, 4  ;;  %p157_p8 = scmp.ne.s32.totalorder %s273_s1, %s156_s27  ;;  %s28_s24 = int_to_ptr.vmem [resolvable:$true] %s27_s24 }
  0x15   :  { %p160_p9 = scmp.lt.u32.totalorder %s156_s27, %s273_s1 }
  0x17   :  { %p162_p10 = pnand %p160_p9, %p157_p8 }
  0x19   :  { %165 = shalt.err (!%p162_p10)
}
  0x1a   :  { %s166_s4 = scalar_lea.vmem %s28_s24, 256  ;;  %p171_p12 = scmp.lt.s32.totalorder %s28_s24, %s28_s24 }
  0x1b   :  { %p167_p11 = scmp.ne.s32.totalorder %s28_s24, %s166_s4  ;;  %p172_p13 = scmp.lt.s32.totalorder %s166_s4, %s166_s4 }
  0x1d   :  { %p173_p0 = por %p172_p13, %p171_p12 }
  0x1f   :  { %p174_p1 = pnand %p173_p0, %p167_p11 }
  0x21   :  { %177 = shalt.err (!%p174_p1)
}
  0x22   :  { %33 = dma.hbm_to_vmem [thread:$0]  %s273_s1, 256, %s28_s24, [#allocation6], %s207_s19, %s207_s19, %s208_s20  }
  0x23   :  { %200 = dma.done.wait [#allocation3], 768  }
  0x24   :  { %201 = vsyncadd [#allocation3], 4294966528 }
  0x25   :  { %202 = dma.done.wait [#allocation6], 256  }
  0x26   :  { %203 = vsyncadd [#allocation6], 4294967040  ;;  %v53_v0 = vld [vmem:[#allocation2 + $0x10] sm:$0xff]  ;;  %v40_v1 = vld [vmem:[#allocation2] sm:$0xff]  ;;  %v210_v4 = vmov 0.0   ;;  %s211_s1 = smov [#allocation7]  }
  0x27   :  { %v54_v2 = vld [vmem:[#allocation2 + $0x18] sm:$0xff]  ;;  %vm55_vm0 = vcmp.ne.f32.partialorder %v53_v0, 0.0  ;;  %vm42_vm1 = vcmp.ne.f32.partialorder %v40_v1, 0.0  ;;  %v41_v3 = vld [vmem:[#allocation2 + $0x8] sm:$0xff]  ;;  %v68_v8 = vld [vmem:[#allocation2 + $0x20] sm:$0xff]  ;;  %s109_s6 = sshll.u32 %s211_s1, 4  ;;  %s110_s6 = int_to_ptr.vmem [resolvable:$true] %s109_s6 }
  0x28   :  { %vm56_vm2 = vcmp.ne.f32.partialorder %v54_v2, 0.0  ;;  %v124_v5 = vsel %vm55_vm0, 1.0, %v210_v4  ;;  %v122_v6 = vsel %vm42_vm1, 1.0, %v210_v4  ;;  %vm43_vm3 = vcmp.ne.f32.partialorder %v41_v3, 0.0  ;;  %v69_v7 = vld [vmem:[#allocation2 + $0x28] sm:$0xff]  ;;  %v83_v19 = vld [vmem:[#allocation5 + $0x8] sm:$0xff]  ;;  %p183_p3 = scmp.lt.s32.totalorder %s110_s6, %s110_s6 }
  0x29   :  { %61 = vmax.xlane.f32.xlu1 %v124_v5  ;;  %48 = vmax.xlane.f32.xlu0 %v122_v6  ;;  %v125_v9 = vsel %vm56_vm2, 1.0, %v210_v4  ;;  %v123_v10 = vsel %vm43_vm3, 1.0, %v210_v4  ;;  %vm71_vm4 = vcmp.ne.f32.partialorder %v69_v7, 0.0  ;;  %vm70_vm5 = vcmp.ne.f32.partialorder %v68_v8, 0.0  ;;  %v82_v21 = vld [vmem:[#allocation5] sm:$0xff]  ;;  %s178_s7 = scalar_lea.vmem %s110_s6, 256 }
  0x2a   :  { %v127_v11 = vsel %vm71_vm4, 1.0, %v210_v4  ;;  %v126_v12 = vsel %vm70_vm5, 1.0, %v210_v4  ;;  %p179_p2 = scmp.ne.s32.totalorder %s110_s6, %s178_s7  ;;  %p184_p4 = scmp.lt.s32.totalorder %s178_s7, %s178_s7 }
  0x2c   :  { %p185_p5 = por %p184_p4, %p183_p3 }
  0x2d   :  { %63 = vmax.xlane.f32.xlu1 %v125_v9  ;;  %50 = vmax.xlane.f32.xlu0 %v123_v10 }
  0x2e   :  { %p186_p6 = pnand %p185_p5, %p179_p2 }
  0x31   :  { %78 = vmax.xlane.f32.xlu1 %v127_v11  ;;  %76 = vmax.xlane.f32.xlu0 %v126_v12 }
  0xb6   :  { %v62_v13 = vpop.xlane.xlu1 %61  ;;  %v49_v14 = vpop.xlane.xlu0 %48 }
  0xb7   :  { %v65_v17 = vadd.f32 %v62_v13, %v49_v14 }
  0xba   :  { %v64_v15 = vpop.xlane.xlu1 %63  ;;  %v51_v16 = vpop.xlane.xlu0 %50 }
  0xbb   :  { %v66_v18 = vadd.f32 %v64_v15, %v51_v16 }
  0xbe   :  { %v79_v20 = vpop.xlane.xlu1 %78  ;;  %v77_v22 = vpop.xlane.xlu0 %76 }
  0xbf   :  { %v81_v23 = vadd.f32 %v79_v20, %v66_v18  ;;  %v80_v24 = vadd.f32 %v77_v22, %v65_v17 }
  0xc1   :  { %v85_v25 = vmul.f32 %v83_v19, %v81_v23  ;;  %v84_v26 = vmul.f32 %v82_v21, %v80_v24 }
  0xc3   :  { %vm95_vm6 = vcmp.ge.f32.partialorder %v85_v25, %v66_v18  ;;  %vm97_vm7 = vcmp.lt.f32.partialorder %v85_v25, %v81_v23  ;;  %vm94_vm8 = vcmp.ge.f32.partialorder %v84_v26, %v65_v17  ;;  %vm96_vm9 = vcmp.lt.f32.partialorder %v84_v26, %v80_v24 }
  0xc4   :  { %vm99_vm10 = vmand %vm95_vm6, %vm97_vm7  ;;  %vm86_vm11 = vcmp.ge.f32.partialorder %v84_v26, %v49_v14  ;;  %vm87_vm12 = vcmp.ge.f32.partialorder %v85_v25, %v51_v16  ;;  %vm88_vm13 = vcmp.lt.f32.partialorder %v84_v26, %v65_v17  ;;  %vm89_vm14 = vcmp.lt.f32.partialorder %v85_v25, %v66_v18 }
  0xc5   :  { %vm98_vm15 = vmand %vm94_vm8, %vm96_vm9 }
  0xc6   :  { %vm90_vm0 = vmand %vm86_vm11, %vm88_vm13 }
  0xc7   :  { %vm91_vm1 = vmand %vm87_vm12, %vm89_vm14  ;;  %v92_v27 = vsel %vm90_vm0, %v53_v0, %v40_v1 }
  0xc8   :  { %v93_v28 = vsel %vm91_vm1, %v54_v2, %v41_v3  ;;  %v100_v29 = vsel %vm98_vm15, %v68_v8, %v92_v27 }
  0xc9   :  { %v101_v30 = vsel %vm99_vm10, %v69_v7, %v93_v28  ;;  %102 = vst [vmem:[#allocation7] sm:$0xff] %v100_v29 }
  0xca   :  { %103 = vst [vmem:[#allocation7 + $0x8] sm:$0xff] %v101_v30 }
  0xcb   :  { %189 = shalt.err (!%p186_p6)
}
  0xcc   :  { %s190_s10 = scalar_lea.hbm %s274_s2, 256 }
  0xcd   :  { %p191_p7 = scmp.ne.s32.totalorder %s274_s2, %s190_s10  ;;  %p194_p8 = scmp.lt.u32.totalorder %s190_s10, %s274_s2 }
  0xcf   :  { %p196_p9 = pnand %p194_p8, %p191_p7 }
  0xd1   :  { %199 = shalt.err (!%p196_p9)
}
  0xd2   :  { %115 = dma.vmem_to_hbm [thread:$0]  %s110_s6, 256, %s274_s2, [#allocation4], %s207_s19, %s207_s19, %s208_s20  }
  0xd3   :  { %204 = dma.done.wait [#allocation4], 256  }
  0xd4   :  { %205 = vsyncadd [#allocation4], 4294967040 }
  0xd5   :  { %119 = vsyncpa [#allocation3], 1 }
  0xd6   :  { %120 = vsyncpa [#allocation6], 1 }
  0xd7   :  { %121 = vsyncpa [#allocation4], 1 }

</bundles_post_ra>
